<compile_context>
chip_gen: v5e
topology: v5e:2x2
jax: 0.10.0
libtpu: 0.0.40
codegen_flags: <defaults>
</compile_context>

<pallas_src>
import functools

import jax
import jax.numpy as jnp
import numpy as np
from jax import lax
from jax.experimental import pallas as pl
from jax.experimental.pallas import tpu as pltpu


def _round_up(x: int, m: int) -> int:
    return (x + m - 1) // m * m


def _round_down(x: int, m: int) -> int:
    return x // m * m


def _vmem_capacity_bytes() -> int:
    try:
        return int(pltpu.get_tpu_info().vmem_capacity_bytes)
    except Exception:
        return 128 << 20  # v5e/v6e default


def _supports_buffered() -> bool:
    """One-time check that BlockSpec accepts pipeline_mode=pl.Buffered."""
    try:
        pl.BlockSpec((8, 128), lambda i: (i, 0), pipeline_mode=pl.Buffered(1))
        return True
    except Exception:
        return False


_HAS_BUFFERED = _supports_buffered()


def _projection_kernel(x_ref, w_ref, b_ref, o_ref):
    # x_ref: (tm, E); w_ref: (tn, E) [PyTorch layout, contracted on last dim];
    # b_ref: (1, tn) f32; o_ref: (tm, tn)
    acc = lax.dot_general(
        x_ref[...], w_ref[...],
        dimension_numbers=(((1,), (1,)), ((), ())),
        preferred_element_type=jnp.float32,
    )
    o_ref[...] = (acc + b_ref[...].astype(jnp.float32)).astype(o_ref.dtype)


def _choose_tiles(M: int, E: int, n_eff: int, itemsize: int,
                  budget: int, sublane: int):
    """Pick (tm, tn).  Budgets for double-buffered weight (Buffered fallback)."""

    def resident(tn_):  # weight + bias, worst-case double-buffered
        return 2 * tn_ * (E + 1) * itemsize

    # Column tile: full n_eff unless the resident weight overflows and n_eff
    # is 128-granular (then tile N in multiples of 128, keeping lane-dense
    # stores and giving the v7x megacore more parallel grid work).
    tn = n_eff
    if n_eff % 128 == 0:
        while tn > 128 and resident(tn) > budget // 2:
            tn = max(128, _round_down(tn // 2, 128))

    # Row tile: as large as fits (amortizes ~0.35us/grid-step + bigger DMAs).
    tm = min(1024, M)
    if tm < M:
        tm = max(sublane, _round_down(tm, sublane))
    # Guarantee >=2 row steps on large M so ("parallel", ...) splits across
    # the two v7x TensorCores (no effect on single-TC v5e/v6e).
    if M >= 256 and pl.cdiv(M, tm) < 2:
        tm = max(sublane, _round_down(pl.cdiv(M, 2), sublane))
    # Shrink until double-buffered x/out tiles + resident weight fit VMEM.
    while tm > sublane and 2 * tm * (E + tn) * itemsize + resident(tn) > budget:
        tm = max(sublane, _round_down(tm // 2, sublane))
    return tm, tn


@functools.partial(
    jax.jit,
    static_argnames=("tm", "tn", "lane_pad", "single_buffer", "vmem_limit"))
def _projection_call(x2, weight, bias, *, tm, tn, lane_pad, single_buffer,
                     vmem_limit):
    M, E = x2.shape
    out_dim = weight.shape[0]
    itemsize = jnp.dtype(x2.dtype).itemsize

    if lane_pad:
        # Lane-dense output (pad ratio <= 1.25); pads fuse inside this jit.
        n_eff = _round_up(out_dim, 128)
        weight = jnp.pad(weight, ((0, n_eff - out_dim), (0, 0)))
        b2 = jnp.pad(bias.astype(jnp.float32).reshape(1, -1),
                     ((0, 0), (0, n_eff - out_dim)))
    else:
        n_eff = out_dim
        b2 = bias.astype(jnp.float32).reshape(1, -1)

    m_grid = pl.cdiv(M, tm)
    n_grid = pl.cdiv(n_eff, tn)

    # Single-buffer the weight/bias only when they are fully resident.
    const_kw = ({"pipeline_mode": pl.Buffered(1)}
                if (single_buffer and n_grid == 1) else {})

    cost = pl.CostEstimate(
        flops=2 * M * E * out_dim,
        transcendentals=0,
        bytes_accessed=(M * E + out_dim * E + out_dim + M * out_dim) * itemsize,
    )

    out = pl.pallas_call(
        _projection_kernel,
        out_shape=jax.ShapeDtypeStruct((M, n_eff), x2.dtype),
        grid_spec=pltpu.PrefetchScalarGridSpec(
            num_scalar_prefetch=0,
            grid=(m_grid, n_grid),
            in_specs=[
                pl.BlockSpec((tm, E), lambda i, j: (i, 0)),               # x rows
                pl.BlockSpec((tn, E), lambda i, j: (j, 0), **const_kw),   # W (out_dim, E)
                pl.BlockSpec((1, tn), lambda i, j: (0, j), **const_kw),   # bias
            ],
            out_specs=pl.BlockSpec((tm, tn), lambda i, j: (i, j)),
        ),
        compiler_params=pltpu.CompilerParams(
            dimension_semantics=("parallel", "parallel"),
            vmem_limit_bytes=vmem_limit,
        ),
        cost_estimate=cost,
    )(x2, weight, b2)

    return out[:, :out_dim] if lane_pad else out


def projection_postprocess(x, weight, bias, *, tm=None, compute_dtype=None,
                           force_pallas=False):
    """y = x @ weight.T + bias.  x: (..., O, E); weight: (out_dim, E); bias: (out_dim,)."""
    *lead, E = x.shape
    out_dim, e_w = weight.shape
    assert e_w == E, "weight last dim must match x embedding dim"

    orig_dtype = x.dtype
    M = int(np.prod(lead)) if lead else 1

    if M == 0:
        return jnp.zeros((*lead, out_dim), orig_dtype)

    # Tiny problems: pallas_call fixed overhead dwarfs 16x32x16 worth of math.
    if not force_pallas and M <= 256 and E <= 256 and out_dim <= 256:
        y = jnp.dot(x.reshape(M, E), weight.T) + bias
        return y.astype(orig_dtype).reshape(*lead, out_dim)

    x2 = x.reshape(M, E)
    if compute_dtype is not None:
        # Memory-bound op: halving the x/W stream (bf16) is a ~1.5-2x win.
        x2 = x2.astype(compute_dtype)
        weight = weight.astype(compute_dtype)
    itemsize = jnp.dtype(x2.dtype).itemsize
    sublane = 8 * 4 // itemsize  # 8 for f32, 16 for bf16

    # Lane-dense output only when the pad is cheap (<= 25% write amplification).
    n_pad = _round_up(out_dim, 128)
    lane_pad = (n_pad != out_dim) and (n_pad * 4 <= out_dim * 5)
    n_eff = n_pad if lane_pad else out_dim

    capacity = _vmem_capacity_bytes()            # 128 MiB v5e/v6e, 64 MiB v7x
    budget = max(16 << 20, int(capacity * 0.45))
    vmem_limit = min(int(capacity * 0.70), 100 << 20)

    tm_auto, tn = _choose_tiles(M, E, n_eff, itemsize, budget, sublane)
    if tm is None:
        tm = tm_auto
    else:
        tm = min(int(tm), M)
        if tm < M:  # tiled rows must respect the sublane multiple
            tm = max(sublane, _round_down(tm, sublane))

    try:
        out2 = _projection_call(x2, weight, bias, tm=tm, tn=tn,
                                lane_pad=lane_pad, single_buffer=_HAS_BUFFERED,
                                vmem_limit=vmem_limit)
    except Exception:
        if not _HAS_BUFFERED:
            raise  # real error: the plain double-buffered path already failed
        # Retry with default double buffering (budget already accounts for it).
        out2 = _projection_call(x2, weight, bias, tm=tm, tn=tn,
                                lane_pad=lane_pad, single_buffer=False,
                                vmem_limit=vmem_limit)

    return out2.astype(orig_dtype).reshape(*lead, out_dim)


if __name__ == "__main__":
    # Module config: in_shape = [O, E] = [8, 32], out_dim = 16; batch = 2.
    B, O, E, out_dim = 2, 8, 32, 16

    key = jax.random.PRNGKey(0)
    kx, kw, kb = jax.random.split(key, 3)

    bound = 1.0 / np.sqrt(E)  # matches nn.Linear init range
    weight = jax.random.uniform(kw, (out_dim, E), jnp.float32, -bound, bound)
    bias = jax.random.uniform(kb, (out_dim,), jnp.float32, -bound, bound)
    x = jax.random.normal(kx, (B, O, E), jnp.float32)

    # 1) Force the Pallas kernel on the shipped small shape.
    y = projection_postprocess(x, weight, bias, force_pallas=True)
    y = jax.block_until_ready(y)
    y_ref = x @ weight.T + bias
    assert y.shape == (B, O, out_dim)
    np.testing.assert_allclose(np.asarray(y), np.asarray(y_ref),
                               rtol=1e-5, atol=1e-5)

    # 2) Default dispatch (tiny shape -> XLA fast path) must match too.
    y_xla = jax.block_until_ready(projection_postprocess(x, weight, bias))
    np.testing.assert_allclose(np.asarray(y_xla), np.asarray(y_ref),
                               rtol=1e-5, atol=1e-5)

    # 3) Larger shape exercising the tiled / ragged-row / megacore-split path.
    B2, O2, E2 = 4, 150, 64
    kx2, kw2, kb2 = jax.random.split(jax.random.PRNGKey(1), 3)
    w2 = jax.random.uniform(kw2, (out_dim, E2), jnp.float32, -0.1, 0.1)
    b2 = jax.random.uniform(kb2, (out_dim,), jnp.float32, -0.1, 0.1)
    x2 = jax.random.normal(kx2, (B2, O2, E2), jnp.float32)
    y2 = jax.block_until_ready(projection_postprocess(x2, w2, b2))
    np.testing.assert_allclose(np.asarray(y2), np.asarray(x2 @ w2.T + b2),
                               rtol=1e-5, atol=1e-5)

    print("KERNEL_OK")
</pallas_src>

<mosaic_0001>
module attributes {stable_mosaic.version = 11 : i64} {
  func.func @_projection_kernel(%arg0: i32, %arg1: i32, %arg2: memref<16x32xf32, #tpu.memory_space<vmem>>, %arg3: memref<16x32xf32, #tpu.memory_space<vmem>>, %arg4: memref<1x16xf32, #tpu.memory_space<vmem>>, %arg5: memref<16x16xf32, #tpu.memory_space<vmem>>) attributes {dimension_semantics = [#tpu.dimension_semantics<parallel>, #tpu.dimension_semantics<parallel>], iteration_bounds = array<i64: 1, 1>, scalar_prefetch = 0 : i64, scratch_operands = 0 : i64, tpu.core_type = #tpu.core_type<tc>, window_params = [{transform_indices = @transform_0, window_bounds = array<i64: 16, 32>}, {pipeline_mode = #tpu.pipeline_mode<synchronous>, transform_indices = @transform_1, window_bounds = array<i64: 16, 32>}, {pipeline_mode = #tpu.pipeline_mode<synchronous>, transform_indices = @transform_2, window_bounds = array<i64: 1, 16>}, {transform_indices = @transform_3, window_bounds = array<i64: 16, 16>}]} {
    %c0 = arith.constant 0 : index
    %c0_0 = arith.constant 0 : index
    %0 = vector.load %arg2[%c0, %c0_0] : memref<16x32xf32, #tpu.memory_space<vmem>>, vector<16x32xf32>
    %c0_1 = arith.constant 0 : index
    %c0_2 = arith.constant 0 : index
    %1 = vector.load %arg3[%c0_1, %c0_2] : memref<16x32xf32, #tpu.memory_space<vmem>>, vector<16x32xf32>
    %cst = arith.constant dense<0.000000e+00> : vector<16x16xf32>
    %2 = tpu.matmul %0, %1, %cst {dimension_numbers = #tpu.dot_dimension_numbers<[1], [1], [0], [0], [0, 0, 1, 0], [], []>} : vector<16x32xf32>, vector<16x32xf32>, vector<16x16xf32> -> vector<16x16xf32>
    %c0_3 = arith.constant 0 : index
    %c0_4 = arith.constant 0 : index
    %3 = vector.load %arg4[%c0_3, %c0_4] : memref<1x16xf32, #tpu.memory_space<vmem>>, vector<1x16xf32>
    %4 = vector.broadcast %3 : vector<1x16xf32> to vector<16x16xf32>
    %5 = arith.addf %2, %4 : vector<16x16xf32>
    %c0_5 = arith.constant 0 : index
    %c0_6 = arith.constant 0 : index
    %6 = vector.load %arg5[%c0_5, %c0_6] : memref<16x16xf32, #tpu.memory_space<vmem>>, vector<16x16xf32>
    tpu.vector_store %arg5[%c0_5, %c0_6], %5 {strides = array<i32>} : memref<16x16xf32, #tpu.memory_space<vmem>>, vector<16x16xf32>,
    return
  }
  func.func @transform_0(%arg0: i32, %arg1: i32) -> (i32, i32) {
    %c0_i32 = arith.constant 0 : i32
    %c0_i32_0 = arith.constant 0 : i32
    return %arg0, %c0_i32 : i32, i32
  }
  func.func @transform_1(%arg0: i32, %arg1: i32) -> (i32, i32) {
    %c0_i32 = arith.constant 0 : i32
    %c0_i32_0 = arith.constant 0 : i32
    return %arg1, %c0_i32 : i32, i32
  }
  func.func @transform_2(%arg0: i32, %arg1: i32) -> (i32, i32) {
    %c0_i32 = arith.constant 0 : i32
    %c0_i32_0 = arith.constant 0 : i32
    return %c0_i32, %arg1 : i32, i32
  }
  func.func @transform_3(%arg0: i32, %arg1: i32) -> (i32, i32) {
    %c0_i32 = arith.constant 0 : i32
    return %arg0, %arg1 : i32, i32
  }
}

module attributes {stable_mosaic.version = 11 : i64} {
  func.func @_projection_kernel(%arg0: i32, %arg1: i32, %arg2: memref<16x32xf32, #tpu.memory_space<vmem>>, %arg3: memref<16x32xf32, #tpu.memory_space<vmem>>, %arg4: memref<1x16xf32, #tpu.memory_space<vmem>>, %arg5: memref<16x16xf32, #tpu.memory_space<vmem>>) attributes {dimension_semantics = [#tpu.dimension_semantics<parallel>, #tpu.dimension_semantics<parallel>], iteration_bounds = array<i64: 1, 1>, scalar_prefetch = 0 : i64, scratch_operands = 0 : i64, tpu.core_type = #tpu.core_type<tc>, window_params = [{transform_indices = @transform_0, window_bounds = array<i64: 16, 32>}, {transform_indices = @transform_1, window_bounds = array<i64: 16, 32>}, {transform_indices = @transform_2, window_bounds = array<i64: 1, 16>}, {transform_indices = @transform_3, window_bounds = array<i64: 16, 16>}]} {
    %c0 = arith.constant 0 : index
    %c0_0 = arith.constant 0 : index
    %0 = vector.load %arg2[%c0, %c0_0] : memref<16x32xf32, #tpu.memory_space<vmem>>, vector<16x32xf32>
    %c0_1 = arith.constant 0 : index
    %c0_2 = arith.constant 0 : index
    %1 = vector.load %arg3[%c0_1, %c0_2] : memref<16x32xf32, #tpu.memory_space<vmem>>, vector<16x32xf32>
    %cst = arith.constant dense<0.000000e+00> : vector<16x16xf32>
    %2 = tpu.matmul %0, %1, %cst {dimension_numbers = #tpu.dot_dimension_numbers<[1], [1], [0], [0], [0, 0, 1, 0], [], []>} : vector<16x32xf32>, vector<16x32xf32>, vector<16x16xf32> -> vector<16x16xf32>
    %c0_3 = arith.constant 0 : index
    %c0_4 = arith.constant 0 : index
    %3 = vector.load %arg4[%c0_3, %c0_4] : memref<1x16xf32, #tpu.memory_space<vmem>>, vector<1x16xf32>
    %4 = vector.broadcast %3 : vector<1x16xf32> to vector<16x16xf32>
    %5 = arith.addf %2, %4 : vector<16x16xf32>
    %c0_5 = arith.constant 0 : index
    %c0_6 = arith.constant 0 : index
    %6 = vector.load %arg5[%c0_5, %c0_6] : memref<16x16xf32, #tpu.memory_space<vmem>>, vector<16x16xf32>
    tpu.vector_store %arg5[%c0_5, %c0_6], %5 {strides = array<i32>} : memref<16x16xf32, #tpu.memory_space<vmem>>, vector<16x16xf32>,
    return
  }
  func.func @transform_0(%arg0: i32, %arg1: i32) -> (i32, i32) {
    %c0_i32 = arith.constant 0 : i32
    %c0_i32_0 = arith.constant 0 : i32
    return %arg0, %c0_i32 : i32, i32
  }
  func.func @transform_1(%arg0: i32, %arg1: i32) -> (i32, i32) {
    %c0_i32 = arith.constant 0 : i32
    %c0_i32_0 = arith.constant 0 : i32
    return %arg1, %c0_i32 : i32, i32
  }
  func.func @transform_2(%arg0: i32, %arg1: i32) -> (i32, i32) {
    %c0_i32 = arith.constant 0 : i32
    %c0_i32_0 = arith.constant 0 : i32
    return %c0_i32, %arg1 : i32, i32
  }
  func.func @transform_3(%arg0: i32, %arg1: i32) -> (i32, i32) {
    %c0_i32 = arith.constant 0 : i32
    return %arg0, %arg1 : i32, i32
  }
}

</mosaic_0001>

<bundles_post_ra>
// kernel: _projection_call.1
= control target key start
LH: loop header
LB: loop body
LE: loop exit
PB: predicated region body
PF: predicated region fallthrough
CT: control target
= control target key end

     0   :  { %8 = vsyncpa [#allocation3], 0  ;;  %s250_s0 = inlined_call_operand.hbm [shape: f32[16,32], index: 0, kind: input, shape index: {}]   ;;  %s251_s1 = inlined_call_operand.hbm [shape: f32[16,32], index: 1, kind: input, shape index: {}]   ;;  %s252_s2 = inlined_call_operand.vmem [shape: f32[1,16], index: 2, kind: input, shape index: {}]   ;;  %s253_s3 = inlined_call_operand.hbm [shape: f32[16,16], index: 3, kind: output, shape index: {}]  }
   0x1   :  { %9 = vsyncpa [#allocation6], 0 }
   0x2   :  { %10 = vsyncpa [#allocation4], 0  ;;  %s15_s14 = sshll.u32 %s250_s0, 4  ;;  %s204_s15 = smov [#allocation2]   ;;  %s16_s14 = int_to_ptr.hbm [resolvable:$true] %s15_s14 }
   0x3   :  { %s17_s16 = sshll.u32 %s204_s15, 4  ;;  %s28_s19 = sshll.u32 %s251_s1, 4  ;;  %s18_s16 = int_to_ptr.vmem [resolvable:$true] %s17_s16  ;;  %s29_s19 = int_to_ptr.hbm [resolvable:$true] %s28_s19 }
   0x4   :  { %s205_s20 = smov 128   ;;  %s206_s21 = smov 8  }
   0x5   :  { %23 = dma.hbm_to_vmem [thread:$0]  %s16_s14, 256, %s18_s16, [#allocation3], %s205_s20, %s205_s20, %s206_s21  }
   0x6   :  { %s207_s22 = smov [#allocation5]  }
   0x7   :  { %s30_s23 = sshll.u32 %s207_s22, 4  ;;  %s31_s23 = int_to_ptr.vmem [resolvable:$true] %s30_s23 }
   0x8   :  { %36 = dma.hbm_to_vmem [thread:$0]  %s29_s19, 256, %s31_s23, [#allocation6], %s205_s20, %s205_s20, %s206_s21  }
   0x9   :  { %198 = dma.done.wait [#allocation3], 256  }
   0xa   :  { %199 = vsyncadd [#allocation3], 4294967040 }
   0xb   :  { %200 = dma.done.wait [#allocation6], 256  }
   0xc   :  { %201 = vsyncadd [#allocation6], 4294967040  ;;  %vm55_vm0 = vcmask 261120   ;;  %v50_v0 = vld [vmem:[#allocation5 + $0x8] sm:$0xff]  ;;  %v49_v1 = vld [vmem:[#allocation5] sm:$0xff]  ;;  %s208_s24 = smov [#allocation7]  }
   0xd   :  { %114 = vmatpush.xpose.msk.msra.mxu0 %vm55_vm0, %v50_v0  ;;  %118 = vmatpush.xpose.msk.msra.mxu1 %vm55_vm0, %v50_v0  ;;  %v47_v2 = vld [vmem:[#allocation2] sm:$0xff]  ;;  %v48_v3 = vld [vmem:[#allocation2 + $0x8] sm:$0xff]  ;;  %s98_s25 = sshll.u32 %s208_s24, 4  ;;  %s100_s28 = sshll.u32 %s253_s3, 4  ;;  %vm91_vm1 = vcmask 130048   ;;  %s99_s25 = int_to_ptr.vmem [resolvable:$true] %s98_s25  ;;  %s101_s28 = int_to_ptr.hbm [resolvable:$true] %s100_s28 }
   0xe   :  { %v125_v4 = vld [vmem:[%s252_s2] ss:$0 sm:$0xff] }
  0x11   :  { %115 = vmatpush.xpose.msk.msra.mxu0 %vm55_vm0, %v49_v1  ;;  %119 = vmatpush.xpose.msk.msra.mxu1 %vm55_vm0, %v49_v1 }
  0x14   :  { %116 = vmatmul.msk.f32.vlgmr.msra.gmra.mxu0 %vm55_vm0, %v47_v2  ;;  %117 = vmatmul.msk.f32.vlgmr.msra.gmra.mxu1 %vm55_vm0, %v48_v3 }
  0x91   :  { %v85_v5 = vpop.f32.mrf.mxu0  ;;  %v88_v6 = vpop.f32.mrf.mxu1 }
  0x92   :  { %v86_v7 = vadd.f32 %v125_v4, %v85_v5  ;;  %v89_v8 = vadd.f32 %v125_v4, %v88_v6 }
  0x94   :  { %92 = vst.msk [vmem:[#allocation7] sm:$0xff] %vm91_vm1, %v86_v7 }
  0x95   :  { %93 = vst.msk [vmem:[#allocation7 + $0x8] sm:$0xff] %vm91_vm1, %v89_v8 }
  0x96   :  { %106 = dma.vmem_to_hbm [thread:$0]  %s99_s25, 256, %s101_s28, [#allocation4], %s205_s20, %s205_s20, %s206_s21  }
  0x97   :  { %202 = dma.done.wait [#allocation4], 256  }
  0x98   :  { %203 = vsyncadd [#allocation4], 4294967040 }
  0x99   :  { %111 = vsyncpa [#allocation3], 1 }
  0x9a   :  { %112 = vsyncpa [#allocation6], 1 }
  0x9b   :  { %113 = vsyncpa [#allocation4], 1 }

// kernel: _projection_call.1
= control target key start
LH: loop header
LB: loop body
LE: loop exit
PB: predicated region body
PF: predicated region fallthrough
CT: control target
= control target key end

     0   :  { %8 = vsyncpa [#allocation3], 0  ;;  %s250_s0 = inlined_call_operand.hbm [shape: f32[16,32], index: 0, kind: input, shape index: {}]   ;;  %s251_s1 = inlined_call_operand.hbm [shape: f32[16,32], index: 1, kind: input, shape index: {}]   ;;  %s252_s2 = inlined_call_operand.vmem [shape: f32[1,16], index: 2, kind: input, shape index: {}]   ;;  %s253_s3 = inlined_call_operand.hbm [shape: f32[16,16], index: 3, kind: output, shape index: {}]  }
   0x1   :  { %9 = vsyncpa [#allocation6], 0 }
   0x2   :  { %10 = vsyncpa [#allocation4], 0  ;;  %s15_s14 = sshll.u32 %s250_s0, 4  ;;  %s204_s15 = smov [#allocation2]   ;;  %s16_s14 = int_to_ptr.hbm [resolvable:$true] %s15_s14 }
   0x3   :  { %s17_s16 = sshll.u32 %s204_s15, 4  ;;  %s28_s19 = sshll.u32 %s251_s1, 4  ;;  %s18_s16 = int_to_ptr.vmem [resolvable:$true] %s17_s16  ;;  %s29_s19 = int_to_ptr.hbm [resolvable:$true] %s28_s19 }
   0x4   :  { %s205_s20 = smov 128   ;;  %s206_s21 = smov 8  }
   0x5   :  { %23 = dma.hbm_to_vmem [thread:$0]  %s16_s14, 256, %s18_s16, [#allocation3], %s205_s20, %s205_s20, %s206_s21  }
   0x6   :  { %s207_s22 = smov [#allocation5]  }
   0x7   :  { %s30_s23 = sshll.u32 %s207_s22, 4  ;;  %s31_s23 = int_to_ptr.vmem [resolvable:$true] %s30_s23 }
   0x8   :  { %36 = dma.hbm_to_vmem [thread:$0]  %s29_s19, 256, %s31_s23, [#allocation6], %s205_s20, %s205_s20, %s206_s21  }
   0x9   :  { %198 = dma.done.wait [#allocation3], 256  }
   0xa   :  { %199 = vsyncadd [#allocation3], 4294967040 }
   0xb   :  { %200 = dma.done.wait [#allocation6], 256  }
   0xc   :  { %201 = vsyncadd [#allocation6], 4294967040  ;;  %vm55_vm0 = vcmask 261120   ;;  %v50_v0 = vld [vmem:[#allocation5 + $0x8] sm:$0xff]  ;;  %v49_v1 = vld [vmem:[#allocation5] sm:$0xff]  ;;  %s208_s24 = smov [#allocation7]  }
   0xd   :  { %114 = vmatpush.xpose.msk.msra.mxu0 %vm55_vm0, %v50_v0  ;;  %118 = vmatpush.xpose.msk.msra.mxu1 %vm55_vm0, %v50_v0  ;;  %v47_v2 = vld [vmem:[#allocation2] sm:$0xff]  ;;  %v48_v3 = vld [vmem:[#allocation2 + $0x8] sm:$0xff]  ;;  %s98_s25 = sshll.u32 %s208_s24, 4  ;;  %s100_s28 = sshll.u32 %s253_s3, 4  ;;  %vm91_vm1 = vcmask 130048   ;;  %s99_s25 = int_to_ptr.vmem [resolvable:$true] %s98_s25  ;;  %s101_s28 = int_to_ptr.hbm [resolvable:$true] %s100_s28 }
   0xe   :  { %v125_v4 = vld [vmem:[%s252_s2] ss:$0 sm:$0xff] }
  0x11   :  { %115 = vmatpush.xpose.msk.msra.mxu0 %vm55_vm0, %v49_v1  ;;  %119 = vmatpush.xpose.msk.msra.mxu1 %vm55_vm0, %v49_v1 }
  0x14   :  { %116 = vmatmul.msk.f32.vlgmr.msra.gmra.mxu0 %vm55_vm0, %v47_v2  ;;  %117 = vmatmul.msk.f32.vlgmr.msra.gmra.mxu1 %vm55_vm0, %v48_v3 }
  0x91   :  { %v85_v5 = vpop.f32.mrf.mxu0  ;;  %v88_v6 = vpop.f32.mrf.mxu1 }
  0x92   :  { %v86_v7 = vadd.f32 %v125_v4, %v85_v5  ;;  %v89_v8 = vadd.f32 %v125_v4, %v88_v6 }
  0x94   :  { %92 = vst.msk [vmem:[#allocation7] sm:$0xff] %vm91_vm1, %v86_v7 }
  0x95   :  { %93 = vst.msk [vmem:[#allocation7 + $0x8] sm:$0xff] %vm91_vm1, %v89_v8 }
  0x96   :  { %106 = dma.vmem_to_hbm [thread:$0]  %s99_s25, 256, %s101_s28, [#allocation4], %s205_s20, %s205_s20, %s206_s21  }
  0x97   :  { %202 = dma.done.wait [#allocation4], 256  }
  0x98   :  { %203 = vsyncadd [#allocation4], 4294967040 }
  0x99   :  { %111 = vsyncpa [#allocation3], 1 }
  0x9a   :  { %112 = vsyncpa [#allocation6], 1 }
  0x9b   :  { %113 = vsyncpa [#allocation4], 1 }

</bundles_post_ra>
